<compile_context>
chip_gen: v5e
topology: v5e:2x2
jax: 0.10.0
libtpu: 0.0.40
codegen_flags: <defaults>
</compile_context>

<pallas_src>
import functools

import jax
import jax.numpy as jnp
from jax.experimental import pallas as pl
from jax.experimental.pallas import tpu as pltpu


def _round_up(x, m):
    return (x + m - 1) // m * m


def _act_quant_kernel(x_ref, o_ref, *, maxq, clip_ratio, sym):
    x = x_ref[...].astype(jnp.float32)  # (tile_rows, D)
    inv_maxq = 1.0 / maxq               # static python constant

    # find_params (per-token, groupsize = -1)
    row_min = jnp.min(x, axis=-1, keepdims=True)
    row_max = jnp.max(x, axis=-1, keepdims=True)
    xmin = jnp.minimum(row_min, 0.0) * clip_ratio
    xmax = jnp.maximum(row_max, 0.0) * clip_ratio

    if sym:
        xmax = jnp.maximum(jnp.abs(xmin), xmax)
        scale = jnp.where(xmax == 0.0, 1.0, xmax * inv_maxq)
        inv_scale = 1.0 / scale  # per-row only: (tile_rows, 1), exact reciprocal
        # STEQuantize.forward (hot path is mul/round/clip/mul -> memory bound)
        q = jnp.clip(jnp.round(x * inv_scale), -(maxq + 1.0), maxq)
        out = scale * q
    else:
        both_zero = jnp.logical_and(xmin == 0.0, xmax == 0.0)
        xmin = jnp.where(both_zero, -1.0, xmin)
        xmax = jnp.where(both_zero, 1.0, xmax)
        scale = (xmax - xmin) * inv_maxq
        inv_scale = 1.0 / scale  # per-row only
        zero = jnp.round(-xmin * inv_scale)
        # AsymSTEQuantize.forward
        q = jnp.clip(jnp.round(x * inv_scale) + zero, 0.0, maxq)
        out = scale * (q - zero)

    o_ref[...] = out.astype(o_ref.dtype)


def act_quantize(x, bits=8, sym=False, clip_ratio=1.0, target_block_bytes=2 << 20):
    """ActQuantizer.configure + find_params + forward, fused per-token."""
    assert 0.0 < clip_ratio <= 1.0, "Clip ratio should be in (0, 1]"
    if bits == 16:
        return x  # forward() identity path

    maxq = float(2 ** (bits - 1) - 1) if sym else float(2 ** bits - 1)

    orig_shape = x.shape
    d = orig_shape[-1]
    x2 = x.reshape(-1, d)
    t = x2.shape[0]
    dtype_bytes = jnp.dtype(x.dtype).itemsize

    # Lane-dense last dim: pad D to a multiple of 128.  Zero-padding is safe
    # because min/max are clamped through 0, so per-row scale/zero are
    # unchanged; padded columns are sliced off afterwards.
    d_pad = _round_up(d, 128)

    # Sublane multiple for the row-tile dimension (f32:8, bf16:16, int8:32).
    sub = {4: 8, 2: 16, 1: 32}.get(dtype_bytes, 8)

    # Pick the row-tile so each block is ~target_block_bytes (mem-bound kernel:
    # bigger tiles amortize the ~0.35us per-step pipeline overhead).
    row_bytes = d_pad * dtype_bytes
    tile = max(sub, (target_block_bytes // row_bytes) // sub * sub)
    # Keep >= 2 grid steps when possible so v7x megacore can split the grid.
    if t > sub:
        tile = min(tile, _round_up(pl.cdiv(t, 2), sub))
    tile = max(sub, min(tile, _round_up(t, sub)))

    # Pad token count so the grid divides evenly (padded rows are all-zero:
    # both branches handle the all-zero row without NaN/inf; rows are sliced
    # off afterwards).
    t_pad = _round_up(t, tile)
    if (t_pad != t) or (d_pad != d):
        x2 = jnp.pad(x2, ((0, t_pad - t), (0, d_pad - d)))

    # Explicit scoped-VMEM budget: 2 double-buffered copies of the input and
    # output block plus headroom for in-kernel f32 temporaries.  Stays above
    # v5e's 16 MiB default and well under v7x's 64 MiB physical VMEM.
    block_bytes = tile * d_pad * dtype_bytes
    vmem_limit = int(max(32 << 20, min(10 * block_bytes, 56 << 20)))

    kernel = functools.partial(
        _act_quant_kernel, maxq=maxq, clip_ratio=clip_ratio, sym=sym
    )

    out = pl.pallas_call(
        kernel,
        out_shape=jax.ShapeDtypeStruct((t_pad, d_pad), x.dtype),
        grid_spec=pltpu.PrefetchScalarGridSpec(
            num_scalar_prefetch=0,
            grid=(t_pad // tile,),
            in_specs=[pl.BlockSpec((tile, d_pad), lambda i: (i, 0))],
            out_specs=pl.BlockSpec((tile, d_pad), lambda i: (i, 0)),
        ),
        compiler_params=pltpu.CompilerParams(
            dimension_semantics=("parallel",),
            vmem_limit_bytes=vmem_limit,
        ),
    )(x2)

    if (t_pad != t) or (d_pad != d):
        out = out[:t, :d]
    return out.reshape(orig_shape)


def act_quant_wrapper_forward(x, weight, bias=None, *,
                              in_bits=8, in_sym=False,
                              out_bits=16, out_sym=False,
                              clip_ratio=1.0):
    """ActQuantWrapper.forward (no Hadamard, no R1/R2): quantize input ->
    Linear -> optionally quantize output."""
    x_dtype = x.dtype
    if in_bits < 16:
        x = act_quantize(x, bits=in_bits, sym=in_sym, clip_ratio=clip_ratio)
    y = jnp.dot(x, weight.T)
    if bias is not None:
        y = y + bias
    y = y.astype(x_dtype)
    if out_bits < 16:
        y = act_quantize(y, bits=out_bits, sym=out_sym, clip_ratio=clip_ratio)
    return y.astype(x_dtype)


def _reference(x, bits, sym, clip_ratio):
    """Pure-JAX reference of find_params + forward (per-token).  Uses the same
    per-row reciprocal formulation as the kernel so results match exactly."""
    if bits == 16:
        return x
    maxq = float(2 ** (bits - 1) - 1) if sym else float(2 ** bits - 1)
    inv_maxq = 1.0 / maxq
    d = x.shape[-1]
    x2 = x.reshape(-1, d).astype(jnp.float32)
    xmin = jnp.minimum(x2.min(axis=1, keepdims=True), 0.0) * clip_ratio
    xmax = jnp.maximum(x2.max(axis=1, keepdims=True), 0.0) * clip_ratio
    if sym:
        xmax = jnp.maximum(jnp.abs(xmin), xmax)
        scale = jnp.where(xmax == 0.0, 1.0, xmax * inv_maxq)
        inv_scale = 1.0 / scale
        q = jnp.clip(jnp.round(x2 * inv_scale), -(maxq + 1.0), maxq)
        out = scale * q
    else:
        both_zero = jnp.logical_and(xmin == 0.0, xmax == 0.0)
        xmin = jnp.where(both_zero, -1.0, xmin)
        xmax = jnp.where(both_zero, 1.0, xmax)
        scale = (xmax - xmin) * inv_maxq
        inv_scale = 1.0 / scale
        zero = jnp.round(-xmin * inv_scale)
        q = jnp.clip(jnp.round(x2 * inv_scale) + zero, 0.0, maxq)
        out = scale * (q - zero)
    return out.astype(x.dtype).reshape(x.shape)


if __name__ == "__main__":
    key = jax.random.PRNGKey(0)
    k1, k2, k3, k4 = jax.random.split(key, 4)

    # Small shapes consistent with the module: [batch, seq, hidden]
    batch, seq, hidden = 2, 8, 128
    x = jax.random.normal(k1, (batch, seq, hidden), dtype=jnp.float32) * 3.0

    bits, clip_ratio = 8, 1.0

    # Asymmetric per-token (configure(bits=8, sym=False))
    out_asym = act_quantize(x, bits=bits, sym=False, clip_ratio=clip_ratio)
    jax.block_until_ready(out_asym)
    ref_asym = _reference(x, bits, False, clip_ratio)
    assert jnp.allclose(out_asym, ref_asym, atol=1e-5, rtol=1e-5)

    # Symmetric per-token (configure(bits=8, sym=True))
    out_sym = act_quantize(x, bits=bits, sym=True, clip_ratio=clip_ratio)
    jax.block_until_ready(out_sym)
    ref_sym = _reference(x, bits, True, clip_ratio)
    assert jnp.allclose(out_sym, ref_sym, atol=1e-5, rtol=1e-5)

    # Ragged shape: non-multiple-of-8 token count, non-multiple-of-128 hidden
    # (exercises the T/D padding path).
    x_rag = jax.random.normal(k2, (3, 5, 96), dtype=jnp.float32) * 2.0
    out_rag = act_quantize(x_rag, bits=4, sym=False, clip_ratio=0.9)
    jax.block_until_ready(out_rag)
    ref_rag = _reference(x_rag, 4, False, 0.9)
    assert jnp.allclose(out_rag, ref_rag, atol=1e-5, rtol=1e-5)

    # bf16 activations
    x_bf = (jax.random.normal(k3, (batch, seq, hidden)) * 3.0).astype(jnp.bfloat16)
    out_bf = act_quantize(x_bf, bits=8, sym=True, clip_ratio=clip_ratio)
    jax.block_until_ready(out_bf)
    ref_bf = _reference(x_bf, 8, True, clip_ratio)
    assert jnp.allclose(out_bf.astype(jnp.float32), ref_bf.astype(jnp.float32),
                        atol=5e-2, rtol=5e-2)

    # bits=16 identity path
    out_id = act_quantize(x, bits=16)
    jax.block_until_ready(out_id)
    assert jnp.array_equal(out_id, x)

    # Full ActQuantWrapper.forward: quantize input -> Linear -> output identity
    w = jax.random.normal(k4, (hidden, hidden), dtype=jnp.float32) * 0.05
    b = jnp.zeros((hidden,), dtype=jnp.float32)
    y = act_quant_wrapper_forward(x, w, b, in_bits=8, in_sym=False, out_bits=16)
    jax.block_until_ready(y)
    y_ref = jnp.dot(_reference(x, 8, False, 1.0), w.T) + b
    assert jnp.allclose(y, y_ref, atol=1e-4, rtol=1e-4)

    print("KERNEL_OK")
</pallas_src>

<mosaic_0001>
module attributes {stable_mosaic.version = 11 : i64} {
  func.func @_act_quant_kernel(%arg0: i32, %arg1: memref<8x128xf32, #tpu.memory_space<vmem>>, %arg2: memref<8x128xf32, #tpu.memory_space<vmem>>) attributes {dimension_semantics = [#tpu.dimension_semantics<parallel>], iteration_bounds = array<i64: 2>, scalar_prefetch = 0 : i64, scratch_operands = 0 : i64, tpu.core_type = #tpu.core_type<tc>, window_params = [{transform_indices = @transform_0, window_bounds = array<i64: 8, 128>}, {transform_indices = @transform_1, window_bounds = array<i64: 8, 128>}]} {
    %c0 = arith.constant 0 : index
    %c0_0 = arith.constant 0 : index
    %0 = vector.load %arg1[%c0, %c0_0] : memref<8x128xf32, #tpu.memory_space<vmem>>, vector<8x128xf32>
    %cst = arith.constant dense<0x7F800000> : vector<8xf32>
    %1 = vector.multi_reduction <minimumf>, %0, %cst [1] : vector<8x128xf32> to vector<8xf32>
    %2 = vector.shape_cast %1 : vector<8xf32> to vector<8x1xf32>
    %cst_1 = arith.constant dense<0xFF800000> : vector<8xf32>
    %3 = vector.multi_reduction <maximumf>, %0, %cst_1 [1] : vector<8x128xf32> to vector<8xf32>
    %4 = vector.shape_cast %3 : vector<8xf32> to vector<8x1xf32>
    %cst_2 = arith.constant 0.000000e+00 : f32
    %5 = vector.broadcast %cst_2 : f32 to vector<8x1xf32>
    %6 = arith.minimumf %2, %5 : vector<8x1xf32>
    %cst_3 = arith.constant 1.000000e+00 : f32
    %7 = vector.broadcast %cst_3 : f32 to vector<8x1xf32>
    %8 = arith.mulf %6, %7 : vector<8x1xf32>
    %cst_4 = arith.constant 0.000000e+00 : f32
    %9 = vector.broadcast %cst_4 : f32 to vector<8x1xf32>
    %10 = arith.maximumf %4, %9 : vector<8x1xf32>
    %cst_5 = arith.constant 1.000000e+00 : f32
    %11 = vector.broadcast %cst_5 : f32 to vector<8x1xf32>
    %12 = arith.mulf %10, %11 : vector<8x1xf32>
    %cst_6 = arith.constant 0.000000e+00 : f32
    %13 = vector.broadcast %cst_6 : f32 to vector<8x1xf32>
    %14 = arith.cmpf oeq, %8, %13 : vector<8x1xf32>
    %cst_7 = arith.constant 0.000000e+00 : f32
    %15 = vector.broadcast %cst_7 : f32 to vector<8x1xf32>
    %16 = arith.cmpf oeq, %12, %15 : vector<8x1xf32>
    %17 = arith.andi %14, %16 : vector<8x1xi1>
    %cst_8 = arith.constant -1.000000e+00 : f32
    %18 = vector.broadcast %cst_8 : f32 to vector<8x1xf32>
    %19 = arith.select %17, %18, %8 : vector<8x1xi1>, vector<8x1xf32>
    %cst_9 = arith.constant 1.000000e+00 : f32
    %20 = vector.broadcast %cst_9 : f32 to vector<8x1xf32>
    %21 = arith.select %17, %20, %12 : vector<8x1xi1>, vector<8x1xf32>
    %22 = arith.subf %21, %19 : vector<8x1xf32>
    %cst_10 = arith.constant 0.00392156886 : f32
    %23 = vector.broadcast %cst_10 : f32 to vector<8x1xf32>
    %24 = arith.mulf %22, %23 : vector<8x1xf32>
    %cst_11 = arith.constant 1.000000e+00 : f32
    %25 = vector.broadcast %cst_11 : f32 to vector<8x1xf32>
    %26 = arith.divf %25, %24 : vector<8x1xf32>
    %cst_12 = arith.constant 0.000000e+00 : f32
    %27 = vector.broadcast %cst_12 : f32 to vector<8x1xf32>
    %28 = arith.subf %27, %19 : vector<8x1xf32>
    %29 = arith.mulf %28, %26 : vector<8x1xf32>
    %30 = math.roundeven %29 : vector<8x1xf32>
    %31 = vector.broadcast %26 : vector<8x1xf32> to vector<8x128xf32>
    %32 = arith.mulf %0, %31 : vector<8x128xf32>
    %33 = math.roundeven %32 : vector<8x128xf32>
    %34 = vector.broadcast %30 : vector<8x1xf32> to vector<8x128xf32>
    %35 = arith.addf %33, %34 : vector<8x128xf32>
    %cst_13 = arith.constant 0.000000e+00 : f32
    %cst_14 = arith.constant 2.550000e+02 : f32
    %36 = vector.broadcast %cst_13 : f32 to vector<8x128xf32>
    %37 = arith.maximumf %36, %35 : vector<8x128xf32>
    %38 = vector.broadcast %cst_14 : f32 to vector<8x128xf32>
    %39 = arith.minimumf %38, %37 : vector<8x128xf32>
    %40 = vector.broadcast %30 : vector<8x1xf32> to vector<8x128xf32>
    %41 = arith.subf %39, %40 : vector<8x128xf32>
    %42 = vector.broadcast %24 : vector<8x1xf32> to vector<8x128xf32>
    %43 = arith.mulf %42, %41 : vector<8x128xf32>
    %c0_15 = arith.constant 0 : index
    %c0_16 = arith.constant 0 : index
    %44 = vector.load %arg2[%c0_15, %c0_16] : memref<8x128xf32, #tpu.memory_space<vmem>>, vector<8x128xf32>
    tpu.vector_store %arg2[%c0_15, %c0_16], %43 {strides = array<i32>} : memref<8x128xf32, #tpu.memory_space<vmem>>, vector<8x128xf32>,
    return
  }
  func.func @transform_0(%arg0: i32) -> (i32, i32) {
    %c0_i32 = arith.constant 0 : i32
    %c0_i32_0 = arith.constant 0 : i32
    return %arg0, %c0_i32 : i32, i32
  }
  func.func @transform_1(%arg0: i32) -> (i32, i32) {
    %c0_i32 = arith.constant 0 : i32
    %c0_i32_0 = arith.constant 0 : i32
    return %arg0, %c0_i32 : i32, i32
  }
}

</mosaic_0001>

<bundles_post_ra>
// kernel: tpu_custom_call.1
= control target key start
LH: loop header
LB: loop body
LE: loop exit
PB: predicated region body
PF: predicated region fallthrough
CT: control target
= control target key end

     0   :  { %6 = vsyncpa [#allocation3], 0  ;;  %s575_s0 = inlined_call_operand.hbm [shape: f32[16,128], index: 0, kind: input, shape index: {}]   ;;  %s576_s1 = inlined_call_operand.hbm [shape: f32[16,128], index: 1, kind: output, shape index: {}]  }
   0x1   :  { %8 = vsyncpa [#allocation3 + $0x1], 0 }
   0x2   :  { %9 = vsyncpa [#allocation4], 0 }
   0x3   :  { %11 = vsyncpa [#allocation4 + $0x1], 0  ;;  %s444_s6 = smov 0   ;;  %s446_s7 = smov 0  }
   0x4   :  { %s448_s8 = smov 0   ;;  %s450_s9 = smov 0  }
   0x5 LB: > { %s465_s10 = sadd.s32 4294967295, %s432_s9   ;;  %s260_s11 = sadd.s32 4294967294, %s432_s9   ;;  %s432_s9 = sphi %s450_s9, %s586_s9   ;;  %s428_s8 = sphi %s448_s8, %s585_s8   ;;  %s424_s7 = sphi %s446_s7, %s584_s7   ;;  %s420_s6 = sphi %s444_s6, %s583_s6  }
   0x6   : > { %s469_s12 = sadd.s32 1, %s432_s9   ;;  %s24_s13 = sadd.s32 1, %s428_s8 }
   0x7   : > { %s21_s14 = ssub.s32 %s432_s9, %s469_s12  ;;  %p31_p0 = scmp.ne.s32.totalorder %s428_s8, %s424_s7 }
   0x8   : > { %p22_p1 = scmp.eq.s32.totalorder %s21_s14, 0  ;;  %p32_p2 = scmp.eq.s32.totalorder %s432_s9, 0 }
   0x9   : > { %p37_p3 = scmp.ne.s32.totalorder %s424_s7, %s420_s6  ;;  %p38_p4 = scmp.eq.s32.totalorder %s465_s10, 0 }
   0xa   : > { %s481_s15 = scalar_select %p22_p1, %s428_s8, %s24_s13  }
   0xb   : > { %p483_p5 = por %p32_p2, %p31_p0  ;;  %p487_p6 = por %p38_p4, %p37_p3 }
   0xc   : > { %p61_p7 = scmp.eq.s32.totalorder %s465_s10, 1  ;;  %p67_p8 = scmp.eq.s32.totalorder %s260_s11, 1 }
   0xd   : > { %p300_p10 = scmp.lt.s32.totalorder %s432_s9, 2  ;;  %s87_s20 = sand.u32 1, %s428_s8  }
   0xe   : > { %p494_p11 = por %p61_p7, %p31_p0  ;;  %p498_p12 = por %p67_p8, %p37_p3 }
   0xf   : > { %s264_s21 = sshll.u32 %s432_s9, 3  ;;  %s263_s22 = sshll.u32 %s87_s20, 3 }
  0x10   : > { %s95_s25 = scalar_lea.hbm %s575_s0, %s264_s21  ;;  %s91_s27 = scalar_lea.vmem [#allocation2], %s263_s22 }
  0x11   : > { %s97_s26 = sshll.u32 %s95_s25, 4  ;;  %s99_s28 = sshll.u32 %s91_s27, 4  ;;  %s98_s26 = int_to_ptr.hbm [resolvable:$true] %s97_s26  ;;  %s100_s28 = int_to_ptr.vmem [resolvable:$true] %s99_s28 }
  0x12   : > { %p509_p13 = pnand %p300_p10, %p483_p5  ;;  %p265_p0 = scmp.ge.s32.totalorder %s432_s9, 1 }
  0x13   : > { %p104_p1 = scmp.lt.s32.totalorder %s432_s9, 3  ;;  %s88_s30 = scalar_lea.sflag [#allocation3], %s87_s20 }
  0x14   : > { %s336_s2 = sshra.s32 %s98_s26, 4  ;;  %p340_p3 = pneg %p509_p13  ;;  %s337_s2 = int_to_ptr.hbm [resolvable:$true] %s336_s2 }
  0x15   : > { %s338_s3 = scalar_lea.hbm %s337_s2, 8  ;;  %s343_s11 = scalar_lea.hbm %s575_s0, 16 }
  0x16   : > { %p339_p2 = scmp.ne.s32.totalorder %s337_s2, %s338_s3  ;;  %p344_p5 = scmp.lt.s32.totalorder %s337_s2, %s575_s0 }
  0x17   : > { %p345_p8 = scmp.lt.s32.totalorder %s343_s11, %s338_s3 }
  0x18   : > { %p341_p4 = pnand %p340_p3, %p339_p2 }
  0x19   : > { %p346_p10 = por %p345_p8, %p344_p5 }
  0x1a   : > { %p342_p7 = pneg %p341_p4 }
  0x1c   : > { %p347_p9 = pnand %p346_p10, %p342_p7 }
  0x1e   : > { %350 = shalt.err (!%p347_p9)
}
  0x1f   : > { %295 = dma.hbm_to_vmem [thread:$0]  (!%p509_p13), %s98_s26, 128, %s100_s28, %s88_s30  }
  0x20   : > { %p105_p2 = pnand %p265_p0, %p104_p1 }
  0x21   : > { %s530_s16 = sand.u32 (!%p105_p2), 1, %s424_s7  }
  0x22   : > { %108 = sbr.rel (%p105_p2) target bundleno = 215 (0xd7), region = 24  ;;  %s266_s20 = sshll.u32 (!%p105_p2), %s530_s16, 3 }
  0x23   : > { %s111_s21 = scalar_lea.sflag (!%p105_p2), [#allocation3], %s530_s16  ;;  %s114_s22 = scalar_lea.vmem (!%p105_p2), [#allocation2], %s266_s20 }
  0x27   : > { %411 = dma.done.wait (%p487_p6), %s111_s21, 128  }
  0x28   : > { %413 = vsyncadd (%p487_p6), %s111_s21, 4294967168  ;;  %v134_v0 = vld [vmem:[%s114_s22] sm:$0xff]  ;;  %s269_s17 = sshll.u32 %s465_s10, 3  ;;  %s133_s26 = scalar_lea.vmem [#allocation5], %s266_s20 }
  0x29   : > { %135 = vmin.xlane.f32.xlu0 %v134_v0  ;;  %s185_s25 = scalar_lea.hbm %s576_s1, %s269_s17  ;;  %s187_s27 = sshll.u32 %s133_s26, 4  ;;  %s188_s27 = int_to_ptr.vmem [resolvable:$true] %s187_s27 }
  0x2a   : > { %s189_s28 = sshll.u32 %s185_s25, 4  ;;  %s175_s29 = scalar_lea.sflag [#allocation4], %s530_s16  ;;  %s190_s28 = int_to_ptr.hbm [resolvable:$true] %s189_s28 }
  0x2b   : > { %s380_s30 = sshra.s32 %s190_s28, 4  ;;  %s386_s4 = scalar_lea.hbm %s576_s1, 16  ;;  %s381_s30 = int_to_ptr.hbm [resolvable:$true] %s380_s30 }
  0x2c   : > { %s382_s10 = scalar_lea.hbm %s381_s30, 8  ;;  %p387_p0 = scmp.lt.s32.totalorder %s381_s30, %s576_s1 }
  0x2d   : > { %p383_p6 = scmp.ne.s32.totalorder %s381_s30, %s382_s10  ;;  %p388_p1 = scmp.lt.s32.totalorder %s386_s4, %s382_s10 }
  0x2f   : > { %p384_p9 = pnand %p383_p6, %p494_p11  ;;  %p389_p3 = por %p388_p1, %p387_p0 }
  0x31   : > { %137 = vmax.xlane.f32.xlu0 %v134_v0  ;;  %p385_p13 = pneg %p384_p9 }
  0x33   : > { %p390_p4 = pnand %p389_p3, %p385_p13 }
  0x9c   : > { %v136_v1 = vpop.xlane.xlu0 %135 }
  0x9d   : > { %v139_v2 = vmin.f32 %v136_v1, 0.0 }
  0x9f   : > { %vm141_vm0 = vcmp.eq.f32.partialorder %v139_v2, 0.0 }
  0xa4   : > { %v138_v3 = vpop.xlane.xlu0 %137 }
  0xa5   : > { %v140_v4 = vmax.f32 %v138_v3, 0.0 }
  0xa7   : > { %vm142_vm1 = vcmp.eq.f32.partialorder %v140_v4, 0.0 }
  0xa8   : > { %vm143_vm2 = vmand %vm141_vm0, %vm142_vm1 }
  0xa9   : > { %v144_v5 = vsel %vm143_vm2, -1.0, %v139_v2  ;;  %v145_v6 = vsel %vm143_vm2, 1.0, %v140_v4 }
  0xaa   : > { %v146_v7 = vsub.f32 %v145_v6, %v144_v5  ;;  %v163_v18 = vsub.f32 0.0, %v144_v5 }
  0xac   : > { %v147_v8 = vmul.f32 0.003921569, %v146_v7 }
  0xae   : > { %334 = vrcp.f32 %v147_v8  ;;  %v159_v12 = vand.u32 2147483648, %v147_v8  ;;  %v157_v14 = vand.u32 2147483647, %v147_v8  ;;  %vm153_vm4 = vweird.f32 %v147_v8 }
  0xb0   : > { %v160_v16 = vor.u32 1.1754944e-38, %v159_v12  ;;  %vm158_vm6 = vcmp.eq.f32.partialorder %v157_v14, 8.507059e+37 }
  0xb4   : > { %v335_v9 = vpop.eup %334 }
  0xb5   : > { %v149_v10 = vmul.f32 %v335_v9, %v147_v8  ;;  %vm154_vm3 = vweird.f32 %v335_v9 }
  0xb6   : > { %vm155_vm5 = vmor %vm153_vm4, %vm154_vm3 }
  0xb7   : > { %v150_v11 = vsub.f32 1.0, %v149_v10 }
  0xb9   : > { %v151_v13 = vmul.f32 %v335_v9, %v150_v11 }
  0xbb   : > { %v152_v15 = vadd.f32 %v335_v9, %v151_v13 }
  0xbd   : > { %v156_v17 = vsel %vm155_vm5, %v335_v9, %v152_v15 }
  0xbe   : > { %v161_v19 = vsel %vm158_vm6, %v160_v16, %v156_v17 }
  0xbf   : > { %v164_v20 = vmul.f32 %v163_v18, %v161_v19  ;;  %v166_v21 = vmul.f32 %v161_v19, %v134_v0 }
  0xc1   : > { %v274_v22 = vcvt.f32.s32 %v164_v20  ;;  %v282_v23 = vcvt.f32.s32 %v166_v21  ;;  %v272_v25 = vand.u32 2147483647, %v164_v20  ;;  %v277_v28 = vand.u32 2147483648, %v164_v20 }
  0xc2   : > { %v280_v29 = vand.u32 2147483647, %v166_v21  ;;  %v285_v31 = vand.u32 2147483648, %v166_v21 }
  0xc3   : > { %v275_v24 = vcvt.s32.f32 %v274_v22  ;;  %v283_v26 = vcvt.s32.f32 %v282_v23  ;;  %vm273_vm7 = vcmp.lt.f32.partialorder %v272_v25, 8388608.0 }
  0xc4   : > { %vm281_vm8 = vcmp.lt.f32.partialorder %v280_v29, 8388608.0 }
  0xc5   : > { %v276_v27 = vand.u32 2147483647, %v275_v24  ;;  %v284_v30 = vand.u32 2147483647, %v283_v26 }
  0xc7   : > { %v278_v32 = vor.u32 %v277_v28, %v276_v27  ;;  %v286_v33 = vor.u32 %v285_v31, %v284_v30 }
  0xc9   : > { %v279_v34 = vsel %vm273_vm7, %v278_v32, %v164_v20  ;;  %v287_v35 = vsel %vm281_vm8, %v286_v33, %v166_v21 }
  0xca   : > { %v168_v36 = vadd.f32 %v287_v35, %v279_v34 }
  0xcc   : > { %v169_v37 = vmax.f32 %v168_v36, 0.0 }
  0xce   : > { %v170_v38 = vmin.f32 %v169_v37, 255.0 }
  0xd0   : > { %v171_v39 = vsub.f32 %v170_v38, %v279_v34 }
  0xd2   : > { %v172_v40 = vmul.f32 %v171_v39, %v147_v8 }
  0xd4   : > { %173 = vst [vmem:[%s133_s26] sm:$0xff] %v172_v40 }
  0xd5   : > { %393 = shalt.err (!%p390_p4)
}
  0xd6   : > { %290 = dma.vmem_to_hbm [thread:$0]  (%p494_p11), %s188_s27, 128, %s190_s28, %s175_s29  }
  0xd7 PF: > { %s201_s13 = sand.u32 1, %s420_s6   ;;  %p582_p7 = scmp.ge.s32.totalorder %s432_s9, 2 }
  0xd8   : > { %s202_s14 = scalar_lea.sflag [#allocation4], %s201_s13 }
  0xd9   : > { %p297_p5 = pnand %p582_p7, %p498_p12 }
  0xdb   : > { %p298_p8 = pneg %p297_p5 }
  0xdd   : > { %415 = dma.done.wait (%p298_p8), %s202_s14, 128  }
  0xde   : > { %417 = vsyncadd (%p298_p8), %s202_s14, 4294967168  ;;  %p14_p10 = scmp.ge.s32.totalorder %s469_s12, 4   ;;  %s583_s6 = smov %s424_s7 }
  0xdf   : > { %s584_s7 = smov %s428_s8  ;;  %s585_s8 = smov %s481_s15 }
  0xe0   : > { %s586_s9 = smov %s469_s12  ;;  %16 = sbr.rel (!%p14_p10) target bundleno = 5 (0x5), region = 69 }
  0xe5   :  { %208 = vsyncpa [#allocation3], 1 }
  0xe6   :  { %210 = vsyncpa [#allocation3 + $0x1], 1 }
  0xe7   :  { %211 = vsyncpa [#allocation4], 1 }
  0xe8   :  { %213 = vsyncpa [#allocation4 + $0x1], 1 }

</bundles_post_ra>
